<compile_context>
chip_gen: v7x
topology: tpu7x:2x2x1
jax: 0.10.0
libtpu: 0.0.40
codegen_flags: <defaults>
</compile_context>

<pallas_src>
import functools
import math

import jax
import jax.numpy as jnp
from jax import lax
from jax.experimental import pallas as pl
from jax.experimental.pallas import tpu as pltpu


def _round_up(x, n):
    return ((x + n - 1) // n) * n


def _mlp_kernel(x_ref, w1_ref, b1_ref, w2_ref, b2_ref, o_ref, *, chunk_rows):
    # x_ref : (TM, D_in)   VMEM   one row-tile of the flattened token dim
    # w1_ref: (D_in, H)    VMEM   resident across the whole grid (H = 2*proj_dim)
    # b1_ref: (1, H)       VMEM
    # w2_ref: (H, P)       VMEM   (P = proj_dim)
    # b2_ref: (1, P)       VMEM
    # o_ref : (TM, P)      VMEM
    w1 = w1_ref[...]
    b1 = b1_ref[...].astype(jnp.float32)
    w2 = w2_ref[...]
    b2 = b2_ref[...].astype(jnp.float32)

    tm = x_ref.shape[0]
    tc = chunk_rows                  # wrapper guarantees tc divides tm
    n_chunks = tm // tc

    def body(c, carry):
        r0 = pl.multiple_of(c * tc, tc)
        x = x_ref[pl.ds(r0, tc), :]
        # First linear + ReLU, kept in f32 (MXU accumulator dtype).
        h = jnp.dot(x, w1, preferred_element_type=jnp.float32) + b1
        h = jnp.maximum(h, 0.0)
        # Second linear: h stays f32 (no downcast) -> matches PyTorch semantics.
        y = jnp.dot(h, w2, preferred_element_type=jnp.float32) + b2
        o_ref[pl.ds(r0, tc), :] = y.astype(o_ref.dtype)
        return carry

    lax.fori_loop(0, n_chunks, body, 0, unroll=True)


def projection_layer_forward(x, w1, b1, w2, b2, *, block_rows=512, chunk_rows=256):
    """x: (..., input_dim) -> (..., proj_dim), matching the nn.Sequential forward."""
    in_dim = x.shape[-1]
    proj_dim = w2.shape[1]
    lead = x.shape[:-1]
    m = int(math.prod(lead)) if lead else 1
    x2 = x.reshape(m, in_dim)

    # Row-tile size: big (>=512) for pipelining/HBM saturation at large M,
    # shrunk (multiple of 8) for small problems so we don't pad 16 rows to 512.
    if m <= block_rows:
        tm = _round_up(max(m, 1), 8)
    else:
        tm = _round_up(block_rows, chunk_rows)
    tc = chunk_rows if tm % chunk_rows == 0 else tm

    # Pad M to a multiple of the tile; padded (zero) rows are sliced off below.
    m_pad = _round_up(m, tm)
    if m_pad != m:
        x2 = jnp.pad(x2, ((0, m_pad - m), (0, 0)))

    grid = (m_pad // tm,)
    kernel = functools.partial(_mlp_kernel, chunk_rows=tc)

    # NOTE(perf): feature dims (32 / 16) are lane-sparse; padding the output to
    # 128 lanes would trade 8x more HBM write bytes for denser stores — only
    # worth it if profiling shows the store slot binding.  Left as-is here.
    out = pl.pallas_call(
        kernel,
        out_shape=jax.ShapeDtypeStruct((m_pad, proj_dim), x.dtype),
        grid=grid,
        in_specs=[
            pl.BlockSpec((tm, in_dim), lambda i: (i, 0)),   # x row-tiles
            pl.BlockSpec(w1.shape, lambda i: (0, 0)),        # weights resident
            pl.BlockSpec(b1.shape, lambda i: (0, 0)),
            pl.BlockSpec(w2.shape, lambda i: (0, 0)),
            pl.BlockSpec(b2.shape, lambda i: (0, 0)),
        ],
        out_specs=pl.BlockSpec((tm, proj_dim), lambda i: (i, 0)),
        compiler_params=pltpu.CompilerParams(
            dimension_semantics=("parallel",)),              # shard rows on v7x
    )(x2, w1, b1, w2, b2)

    out = out[:m]
    return out.reshape(*lead, proj_dim)


def init_projection_params(key, input_dim, proj_dim, dtype=jnp.float32):
    """Deterministic init mimicking PyTorch nn.Linear defaults
    (kaiming-uniform weights, uniform bias with bound 1/sqrt(fan_in)).
    Weights returned as (in_features, out_features)."""
    hidden = 2 * proj_dim
    k1, k2, k3, k4 = jax.random.split(key, 4)

    bound1 = 1.0 / math.sqrt(input_dim)
    w1 = jax.random.uniform(k1, (input_dim, hidden), dtype, -bound1, bound1)
    b1 = jax.random.uniform(k2, (1, hidden), dtype, -bound1, bound1)

    bound2 = 1.0 / math.sqrt(hidden)
    w2 = jax.random.uniform(k3, (hidden, proj_dim), dtype, -bound2, bound2)
    b2 = jax.random.uniform(k4, (1, proj_dim), dtype, -bound2, bound2)
    return w1, b1, w2, b2


if __name__ == "__main__":
    input_dim = 32
    proj_dim = 16

    key = jax.random.PRNGKey(0)
    kx, kp, kx2 = jax.random.split(key, 3)
    w1, b1, w2, b2 = init_projection_params(kp, input_dim, proj_dim)

    # Small shape matching the module's typical use: x (2, 8, 32) -> (2, 8, 16).
    x_small = jax.random.normal(kx, (2, 8, input_dim), jnp.float32)
    out_small = jax.block_until_ready(
        projection_layer_forward(x_small, w1, b1, w2, b2))
    ref_small = (jnp.maximum(x_small.reshape(-1, input_dim) @ w1 + b1, 0.0)
                 @ w2 + b2).reshape(2, 8, proj_dim)
    assert out_small.shape == (2, 8, proj_dim)
    assert jnp.allclose(out_small, ref_small, atol=1e-4, rtol=1e-4), \
        "small-shape mismatch vs reference"

    # Larger token count to exercise the multi-tile, padded, parallel-grid path
    # (M = 3*350 = 1050 -> padded to 1536 rows, 3 row-tiles of 512).
    x_big = jax.random.normal(kx2, (3, 350, input_dim), jnp.float32)
    out_big = jax.block_until_ready(
        projection_layer_forward(x_big, w1, b1, w2, b2))
    ref_big = (jnp.maximum(x_big.reshape(-1, input_dim) @ w1 + b1, 0.0)
               @ w2 + b2).reshape(3, 350, proj_dim)
    assert out_big.shape == (3, 350, proj_dim)
    assert jnp.allclose(out_big, ref_big, atol=1e-4, rtol=1e-4), \
        "tiled-path mismatch vs reference"

    print("KERNEL_OK")
</pallas_src>

<mosaic_0001>
module attributes {stable_mosaic.version = 11 : i64} {
  func.func @_mlp_kernel(%arg0: i32, %arg1: memref<16x32xf32, #tpu.memory_space<vmem>>, %arg2: memref<32x32xf32, #tpu.memory_space<vmem>>, %arg3: memref<1x32xf32, #tpu.memory_space<vmem>>, %arg4: memref<32x16xf32, #tpu.memory_space<vmem>>, %arg5: memref<1x16xf32, #tpu.memory_space<vmem>>, %arg6: memref<16x16xf32, #tpu.memory_space<vmem>>) attributes {dimension_semantics = [#tpu.dimension_semantics<parallel>], iteration_bounds = array<i64: 1>, scalar_prefetch = 0 : i64, scratch_operands = 0 : i64, tpu.core_type = #tpu.core_type<tc>, window_params = [{transform_indices = @transform_0, window_bounds = array<i64: 16, 32>}, {pipeline_mode = #tpu.pipeline_mode<synchronous>, transform_indices = @transform_1, window_bounds = array<i64: 32, 32>}, {pipeline_mode = #tpu.pipeline_mode<synchronous>, transform_indices = @transform_2, window_bounds = array<i64: 1, 32>}, {pipeline_mode = #tpu.pipeline_mode<synchronous>, transform_indices = @transform_3, window_bounds = array<i64: 32, 16>}, {pipeline_mode = #tpu.pipeline_mode<synchronous>, transform_indices = @transform_4, window_bounds = array<i64: 1, 16>}, {transform_indices = @transform_5, window_bounds = array<i64: 16, 16>}]} {
    %c0 = arith.constant 0 : index
    %c0_0 = arith.constant 0 : index
    %0 = vector.load %arg2[%c0, %c0_0] : memref<32x32xf32, #tpu.memory_space<vmem>>, vector<32x32xf32>
    %c0_1 = arith.constant 0 : index
    %c0_2 = arith.constant 0 : index
    %1 = vector.load %arg3[%c0_1, %c0_2] : memref<1x32xf32, #tpu.memory_space<vmem>>, vector<1x32xf32>
    %c0_3 = arith.constant 0 : index
    %c0_4 = arith.constant 0 : index
    %2 = vector.load %arg4[%c0_3, %c0_4] : memref<32x16xf32, #tpu.memory_space<vmem>>, vector<32x16xf32>
    %c0_5 = arith.constant 0 : index
    %c0_6 = arith.constant 0 : index
    %3 = vector.load %arg5[%c0_5, %c0_6] : memref<1x16xf32, #tpu.memory_space<vmem>>, vector<1x16xf32>
    %c0_i32 = arith.constant 0 : i32
    %c16_i32 = arith.constant 16 : i32
    %4 = arith.muli %c0_i32, %c16_i32 : i32
    %5 = tpu.assume_multiple %4, 16 : i32
    %6 = arith.index_cast %5 : i32 to index
    %c0_7 = arith.constant 0 : index
    %7 = vector.load %arg1[%6, %c0_7] : memref<16x32xf32, #tpu.memory_space<vmem>>, vector<16x32xf32>
    %cst = arith.constant dense<0.000000e+00> : vector<16x32xf32>
    %8 = tpu.matmul %7, %0, %cst {dimension_numbers = #tpu.dot_dimension_numbers<[1], [0], [0], [1], [0, 0, 1, 1], [], []>} : vector<16x32xf32>, vector<32x32xf32>, vector<16x32xf32> -> vector<16x32xf32>
    %9 = vector.broadcast %1 : vector<1x32xf32> to vector<16x32xf32>
    %10 = arith.addf %8, %9 : vector<16x32xf32>
    %cst_8 = arith.constant 0.000000e+00 : f32
    %11 = vector.broadcast %cst_8 : f32 to vector<16x32xf32>
    %12 = arith.maximumf %10, %11 : vector<16x32xf32>
    %cst_9 = arith.constant dense<0.000000e+00> : vector<16x16xf32>
    %13 = tpu.matmul %12, %2, %cst_9 {dimension_numbers = #tpu.dot_dimension_numbers<[1], [0], [0], [1], [0, 0, 1, 1], [], []>} : vector<16x32xf32>, vector<32x16xf32>, vector<16x16xf32> -> vector<16x16xf32>
    %14 = vector.broadcast %3 : vector<1x16xf32> to vector<16x16xf32>
    %15 = arith.addf %13, %14 : vector<16x16xf32>
    %16 = arith.index_cast %5 : i32 to index
    %c0_10 = arith.constant 0 : index
    %17 = vector.load %arg6[%16, %c0_10] : memref<16x16xf32, #tpu.memory_space<vmem>>, vector<16x16xf32>
    tpu.vector_store %arg6[%16, %c0_10], %15 {strides = array<i32>} : memref<16x16xf32, #tpu.memory_space<vmem>>, vector<16x16xf32>,
    %c1_i32 = arith.constant 1 : i32
    return
  }
  func.func @transform_0(%arg0: i32) -> (i32, i32) {
    %c0_i32 = arith.constant 0 : i32
    %c0_i32_0 = arith.constant 0 : i32
    return %arg0, %c0_i32 : i32, i32
  }
  func.func @transform_1(%arg0: i32) -> (i32, i32) {
    %c0_i32 = arith.constant 0 : i32
    %c0_i32_0 = arith.constant 0 : i32
    %c0_i32_1 = arith.constant 0 : i32
    return %c0_i32, %c0_i32_0 : i32, i32
  }
  func.func @transform_2(%arg0: i32) -> (i32, i32) {
    %c0_i32 = arith.constant 0 : i32
    %c0_i32_0 = arith.constant 0 : i32
    %c0_i32_1 = arith.constant 0 : i32
    return %c0_i32, %c0_i32_0 : i32, i32
  }
  func.func @transform_3(%arg0: i32) -> (i32, i32) {
    %c0_i32 = arith.constant 0 : i32
    %c0_i32_0 = arith.constant 0 : i32
    %c0_i32_1 = arith.constant 0 : i32
    return %c0_i32, %c0_i32_0 : i32, i32
  }
  func.func @transform_4(%arg0: i32) -> (i32, i32) {
    %c0_i32 = arith.constant 0 : i32
    %c0_i32_0 = arith.constant 0 : i32
    %c0_i32_1 = arith.constant 0 : i32
    return %c0_i32, %c0_i32_0 : i32, i32
  }
  func.func @transform_5(%arg0: i32) -> (i32, i32) {
    %c0_i32 = arith.constant 0 : i32
    %c0_i32_0 = arith.constant 0 : i32
    return %arg0, %c0_i32 : i32, i32
  }
}

</mosaic_0001>

<bundles_post_ra>
// kernel: tpu_custom_call.1
= control target key start
LH: loop header
LB: loop body
LE: loop exit
PB: predicated region body
PF: predicated region fallthrough
CT: control target
= control target key end

     0   :  { %vm39_vm0 = vcmask 261120   ;;  %s397_s0 = inlined_call_operand.vmem [shape: f32[16,32], index: 0, kind: input, shape index: {}]   ;;  %s398_s1 = inlined_call_operand.vmem [shape: f32[32,32], index: 1, kind: input, shape index: {}]   ;;  %s399_s2 = inlined_call_operand.vmem [shape: f32[1,32], index: 2, kind: input, shape index: {}]   ;;  %s400_s3 = inlined_call_operand.vmem [shape: f32[32,16], index: 3, kind: input, shape index: {}]   ;;  %s401_s4 = inlined_call_operand.vmem [shape: f32[1,16], index: 4, kind: input, shape index: {}]   ;;  %s402_s5 = inlined_call_operand.hbm [shape: f32[16,16], index: 5, kind: output, shape index: {}]  }
   0x1   :  { %v21_v0 = vld [vmem:[%s398_s1] sm:$0xff]  ;;  %v22_v1 = vld [vmem:[%s398_s1 + $0x8] sm:$0xff]  ;;  %v23_v2 = vld [vmem:[%s398_s1 + $0x10] sm:$0xff] }
   0x2   :  { %v269_v3 = vpack.c.bf16 %v22_v1, %v21_v0  ;;  %v24_v4 = vld [vmem:[%s398_s1 + $0x18] sm:$0xff]  ;;  %v31_v5 = vld [vmem:[%s397_s0] sm:$0xff]  ;;  %v27_v8 = vld [vmem:[%s400_s3 + $0x8] sm:$0xff] }
   0x3   :  { %v273_v6 = vpack.c.bf16 %v24_v4, %v23_v2  ;;  %255 = vmatprep.mubr.msk.f32.mxu0 %vm39_vm0, %v31_v5  ;;  %v26_v7 = vld [vmem:[%s400_s3] sm:$0xff] }
   0x4   :  { %10 = vsyncpa [#allocation3], 0  ;;  %270 = vmatprep.subr.bf16.mxu0 %v269_v3  ;;  %v277_v9 = vpack.c.bf16 %v27_v8, %v26_v7  ;;  %v32_v10 = vld [vmem:[%s397_s0 + $0x8] sm:$0xff]  ;;  %v28_v11 = vld [vmem:[%s400_s3 + $0x10] sm:$0xff]  ;;  %vm210_vm1 = vcmask 130048  }
   0x5   :  { %272 = vmatpush3.bf16.msra.mxu0 %v269_v3  ;;  %v29_v12 = vld [vmem:[%s400_s3 + $0x18] sm:$0xff]  ;;  %v229_v14 = vld [vmem:[%s399_s2] ss:$0 sm:$0xff]  ;;  %s312_s3 = smov [#allocation2]  }
   0x6   :  { %274 = vmatprep.subr.bf16.mxu0 %v273_v6  ;;  %278 = vmatprep.subr.bf16.mxu1 %v277_v9  ;;  %v281_v13 = vpack.c.bf16 %v29_v12, %v28_v11  ;;  %v232_v21 = vld [vmem:[%s401_s4] ss:$0 sm:$0xff]  ;;  %s218_s15 = sshll.u32 %s312_s3, 4  ;;  %s219_s15 = int_to_ptr.vmem [resolvable:$true] %s218_s15 }
   0x7   :  { %280 = vmatpush3.bf16.msra.mxu1 %v277_v9  ;;  %s288_s2 = scalar_lea.vmem %s219_s15, 256  ;;  %p293_p1 = scmp.lt.s32.totalorder %s219_s15, %s219_s15 }
   0x8   :  { %282 = vmatprep.subr.bf16.mxu1 %v281_v13  ;;  %p289_p0 = scmp.ne.s32.totalorder %s219_s15, %s288_s2  ;;  %p294_p2 = scmp.lt.s32.totalorder %s288_s2, %s288_s2 }
   0x9   :  { %276 = vmatpush3.bf16.msra.mxu0 %v273_v6 }
   0xa   :  { %p295_p3 = por %p294_p2, %p293_p1 }
   0xb   :  { %284 = vmatpush3.bf16.msra.mxu1 %v281_v13 }
   0xc   :  { %256 = vmatmul.mubr.msk.f32.vlgmr.msra.gmra.mrb[0].mxu0 %vm39_vm0, %v32_v10  ;;  %p296_p4 = pnand %p295_p3, %p289_p0 }
  0xdf   :  { %v257_v15 = vpop.f32.mrb[0].mxu0 }
  0xe0   :  { %v118_v16 = vadd.f32 %v257_v15, %v229_v14  ;;  %v112_v17 = vpop.f32.mrb[1].mxu0 }
  0xe1   :  { %v113_v18 = vadd.f32 %v229_v14, %v112_v17 }
  0xe2   :  { %v122_v20 = vmax.f32 %v118_v16, 0.0 }
  0xe3   :  { %v121_v19 = vmax.f32 %v113_v18, 0.0 }
  0xe5   :  { %266 = vmatprep.mubr.msk.f32.mxu1 %vm39_vm0, %v121_v19 }
  0xe6   :  { %267 = vmatmul.mubr.msk.f32.vlgmr.msra.gmra.mrb[0].mxu1 %vm39_vm0, %v122_v20 }
 0x1b9   :  { %v268_v22 = vpop.f32.mrb[0].mxu1 }
 0x1ba   :  { %v207_v23 = vadd.f32 %v268_v22, %v232_v21  ;;  %v201_v24 = vpop.f32.mrb[1].mxu1 }
 0x1bb   :  { %v202_v25 = vadd.f32 %v232_v21, %v201_v24 }
 0x1bc   :  { %212 = vst.msk [vmem:[#allocation2 + $0x8] sm:$0xff] %vm210_vm1, %v207_v23 }
 0x1bd   :  { %211 = vst.msk [vmem:[#allocation2] sm:$0xff] %vm210_vm1, %v202_v25 }
 0x1be   :  { %299 = shalt.err (!%p296_p4)
}
 0x1bf   :  { %s300_s4 = scalar_lea.hbm %s402_s5, 256 }
 0x1c0   :  { %p301_p5 = scmp.ne.s32.totalorder %s402_s5, %s300_s4  ;;  %p304_p6 = scmp.lt.u32.totalorder %s300_s4, %s402_s5 }
 0x1c2   :  { %p306_p7 = pnand %p304_p6, %p301_p5 }
 0x1c4   :  { %309 = shalt.err (!%p306_p7)
}
 0x1c5   :  { %s313_s22 = smov 128   ;;  %s314_s23 = smov 8  }
 0x1c6   :  { %224 = dma.vmem_to_hbm [thread:$0]  %s219_s15, 256, %s402_s5, [#allocation3], %s313_s22, %s313_s22, %s314_s23  }
 0x1c7   :  { %310 = dma.done.wait [#allocation3], 256  }
 0x1c8   :  { %311 = vsyncadd [#allocation3], 4294967040 }
 0x1c9   :  { %228 = vsyncpa [#allocation3], 1 }

</bundles_post_ra>
